<compile_context>
chip_gen: v7x
topology: tpu7x:2x2x1
jax: 0.10.0
libtpu: 0.0.40
codegen_flags: <defaults>
</compile_context>

<pallas_src>
import functools

import jax
import jax.numpy as jnp
from jax.experimental import pallas as pl
from jax.experimental.pallas import tpu as pltpu


D_IN, D_H1, D_H2 = 360, 180, 90


def _round_up(x, m):
    return ((x + m - 1) // m) * m


def mlp_kernel(x_ref, w1_ref, b1_ref, w2_ref, b2_ref, w3t_ref, b3t_ref, o_ref):
    # x tile: (TILE_B, 360) f32; cast to bf16 in-kernel (avoids a separate
    # wrapper pad/cast pass over x in HBM). Matmuls accumulate in f32 on MXU.
    x = x_ref[...].astype(jnp.bfloat16)

    h1 = jnp.dot(x, w1_ref[...], preferred_element_type=jnp.float32) + b1_ref[...]
    h1 = jnp.maximum(h1, 0.0)                                   # ReLU (f32 VPU)

    h2 = jnp.dot(h1.astype(jnp.bfloat16), w2_ref[...],
                 preferred_element_type=jnp.float32) + b2_ref[...]
    h2 = jnp.maximum(h2, 0.0)                                   # ReLU (f32 VPU)

    # Dropout(0.3) in eval mode == identity.

    # Third layer computed transposed: yT = W3^T @ h2^T -> (OUT_PAD, TILE_B).
    # Lanes carry the batch tile (dense), sublanes carry the (tiny) padded
    # output dim -> much smaller writeback than a 128-lane padded output.
    yT = jax.lax.dot_general(
        w3t_ref[...], h2.astype(jnp.bfloat16),
        dimension_numbers=(((1,), (1,)), ((), ())),
        preferred_element_type=jnp.float32)
    o_ref[...] = (yT + b3t_ref[...]).astype(o_ref.dtype)


def prepare_params(params, out_size):
    """Pack weights once (outside the per-call path).

    Returns (w1 bf16 (360,180), b1 f32 (1,180), w2 bf16 (180,90), b2 f32 (1,90),
             w3T bf16 (out_pad,90), b3T f32 (out_pad,1)).
    """
    w1, b1, w2, b2, w3, b3 = params
    out_pad = max(8, _round_up(out_size, 8))
    w1b = jnp.asarray(w1, jnp.bfloat16)
    w2b = jnp.asarray(w2, jnp.bfloat16)
    w3t = jnp.zeros((out_pad, D_H2), jnp.bfloat16).at[:out_size, :].set(
        jnp.asarray(w3, jnp.bfloat16).T)
    b1f = jnp.asarray(b1, jnp.float32).reshape(1, D_H1)
    b2f = jnp.asarray(b2, jnp.float32).reshape(1, D_H2)
    b3t = jnp.zeros((out_pad, 1), jnp.float32).at[:out_size, 0].set(
        jnp.asarray(b3, jnp.float32).reshape(-1))
    return (w1b, b1f, w2b, b2f, w3t, b3t)


@functools.partial(jax.jit, static_argnames=("out_size", "tile_b"))
def mlp_forward_packed(x, packed, *, out_size, tile_b=1024):
    """x: (B, 360) float. packed: output of prepare_params. Returns (B, out_size) f32."""
    w1b, b1f, w2b, b2f, w3t, b3t = packed
    B = x.shape[0]
    out_pad = w3t.shape[0]

    # --- batch-tile selection -------------------------------------------------
    tile_b = max(128, _round_up(tile_b, 128))
    if B > tile_b:
        tb = tile_b                                  # >=2 steps automatically
    elif B >= 256:
        tb = _round_up((B + 1) // 2, 128)            # >=2 parallel steps (v7x: 2 TCs)
    else:
        tb = max(8, _round_up(B, 8))                 # single tight tile for tiny B
    num_tiles = pl.cdiv(B, tb)
    b_pad = num_tiles * tb

    xk = x.astype(jnp.float32)
    if b_pad != B:
        # Only ragged batches pay a pad pass; padded rows are deterministic
        # zeros (=> finite garbage-free outputs) and are sliced off below.
        xk = jnp.pad(xk, ((0, b_pad - B), (0, 0)))

    flops = 2 * b_pad * (D_IN * D_H1 + D_H1 * D_H2 + D_H2 * out_pad)
    bytes_accessed = (
        xk.size * 4
        + (w1b.size + w2b.size + w3t.size) * 2
        + (b1f.size + b2f.size + b3t.size) * 4
        + out_pad * b_pad * 4
    )

    out_t = pl.pallas_call(
        mlp_kernel,
        out_shape=jax.ShapeDtypeStruct((out_pad, b_pad), jnp.float32),
        grid=(num_tiles,),
        in_specs=[
            pl.BlockSpec((tb, D_IN), lambda i: (i, 0)),       # x: tiled over batch
            pl.BlockSpec((D_IN, D_H1), lambda i: (0, 0)),     # w1: resident
            pl.BlockSpec((1, D_H1), lambda i: (0, 0)),        # b1: resident
            pl.BlockSpec((D_H1, D_H2), lambda i: (0, 0)),     # w2: resident
            pl.BlockSpec((1, D_H2), lambda i: (0, 0)),        # b2: resident
            pl.BlockSpec((out_pad, D_H2), lambda i: (0, 0)),  # w3^T (padded): resident
            pl.BlockSpec((out_pad, 1), lambda i: (0, 0)),     # b3^T (padded): resident
        ],
        out_specs=pl.BlockSpec((out_pad, tb), lambda i: (0, i)),
        compiler_params=pltpu.CompilerParams(
            dimension_semantics=("parallel",),
            vmem_limit_bytes=32 * 1024 * 1024),
        cost_estimate=pl.CostEstimate(
            flops=flops, transcendentals=0, bytes_accessed=bytes_accessed),
    )(xk, w1b, b1f, w2b, b2f, w3t, b3t)

    # Transposed (out, batch) -> (batch, out); tiny slice/transpose in XLA.
    return out_t[:out_size, :B].T


def mlp_forward(x, params, *, out_size, tile_b=1024):
    packed = prepare_params(params, out_size)
    return mlp_forward_packed(x, packed, out_size=out_size, tile_b=tile_b)


def init_linear(key, fan_in, fan_out, dtype=jnp.float32):
    """PyTorch nn.Linear default init: U(-1/sqrt(fan_in), 1/sqrt(fan_in))."""
    kw, kb = jax.random.split(key)
    bound = 1.0 / (fan_in ** 0.5)
    # Stored as (in, out) so the kernel does x @ W (== x @ weight.T in torch).
    w = jax.random.uniform(kw, (fan_in, fan_out), dtype, minval=-bound, maxval=bound)
    b = jax.random.uniform(kb, (1, fan_out), dtype, minval=-bound, maxval=bound)
    return w, b


def reference_forward(x, params):
    """Pure-JAX reference with the same bf16-input / f32-accumulate recipe."""
    w1, b1, w2, b2, w3, b3 = params
    h1 = jnp.dot(x.astype(jnp.bfloat16), w1.astype(jnp.bfloat16),
                 preferred_element_type=jnp.float32) + b1
    h1 = jnp.maximum(h1, 0.0)
    h2 = jnp.dot(h1.astype(jnp.bfloat16), w2.astype(jnp.bfloat16),
                 preferred_element_type=jnp.float32) + b2
    h2 = jnp.maximum(h2, 0.0)
    return jnp.dot(h2.astype(jnp.bfloat16), w3.astype(jnp.bfloat16),
                   preferred_element_type=jnp.float32) + b3


if __name__ == "__main__":
    output_size = 10

    root = jax.random.PRNGKey(0)
    kx, k1, k2, k3, kx2 = jax.random.split(root, 5)

    w1, b1 = init_linear(k1, D_IN, D_H1)
    w2, b2 = init_linear(k2, D_H1, D_H2)
    w3, b3 = init_linear(k3, D_H2, output_size)
    params = (w1, b1, w2, b2, w3, b3)
    packed = prepare_params(params, output_size)

    # Small batch (single tight tile path).
    batch = 8
    x = jax.random.normal(kx, (batch, D_IN), jnp.float32)
    out = jax.block_until_ready(
        mlp_forward_packed(x, packed, out_size=output_size))
    ref = reference_forward(x, params)
    assert out.shape == (batch, output_size), out.shape
    assert jnp.allclose(out, ref, atol=2e-3, rtol=2e-2), \
        "mismatch vs pure-JAX reference (small batch)"

    # Ragged mid-size batch (multi-tile + zero-pad path).
    batch2 = 300
    x2 = jax.random.normal(kx2, (batch2, D_IN), jnp.float32)
    out2 = jax.block_until_ready(
        mlp_forward_packed(x2, packed, out_size=output_size))
    ref2 = reference_forward(x2, params)
    assert out2.shape == (batch2, output_size), out2.shape
    assert jnp.allclose(out2, ref2, atol=2e-3, rtol=2e-2), \
        "mismatch vs pure-JAX reference (ragged batch)"

    print("KERNEL_OK")
</pallas_src>

<mosaic_0001>
module attributes {stable_mosaic.version = 11 : i64} {
  func.func @mlp_kernel(%arg0: i32, %arg1: memref<8x360xf32, #tpu.memory_space<vmem>>, %arg2: memref<360x180xbf16, #tpu.memory_space<vmem>>, %arg3: memref<1x180xf32, #tpu.memory_space<vmem>>, %arg4: memref<180x90xbf16, #tpu.memory_space<vmem>>, %arg5: memref<1x90xf32, #tpu.memory_space<vmem>>, %arg6: memref<16x90xbf16, #tpu.memory_space<vmem>>, %arg7: memref<16x1xf32, #tpu.memory_space<vmem>>, %arg8: memref<16x8xf32, #tpu.memory_space<vmem>>) attributes {dimension_semantics = [#tpu.dimension_semantics<parallel>], iteration_bounds = array<i64: 1>, scalar_prefetch = 0 : i64, scratch_operands = 0 : i64, tpu.core_type = #tpu.core_type<tc>, window_params = [{transform_indices = @transform_0, window_bounds = array<i64: 8, 360>}, {pipeline_mode = #tpu.pipeline_mode<synchronous>, transform_indices = @transform_1, window_bounds = array<i64: 360, 180>}, {pipeline_mode = #tpu.pipeline_mode<synchronous>, transform_indices = @transform_2, window_bounds = array<i64: 1, 180>}, {pipeline_mode = #tpu.pipeline_mode<synchronous>, transform_indices = @transform_3, window_bounds = array<i64: 180, 90>}, {pipeline_mode = #tpu.pipeline_mode<synchronous>, transform_indices = @transform_4, window_bounds = array<i64: 1, 90>}, {pipeline_mode = #tpu.pipeline_mode<synchronous>, transform_indices = @transform_5, window_bounds = array<i64: 16, 90>}, {pipeline_mode = #tpu.pipeline_mode<synchronous>, transform_indices = @transform_6, window_bounds = array<i64: 16, 1>}, {transform_indices = @transform_7, window_bounds = array<i64: 16, 8>}]} {
    %c0 = arith.constant 0 : index
    %c0_0 = arith.constant 0 : index
    %0 = vector.load %arg1[%c0, %c0_0] : memref<8x360xf32, #tpu.memory_space<vmem>>, vector<8x360xf32>
    %1 = arith.truncf %0 : vector<8x360xf32> to vector<8x360xbf16>
    %c0_1 = arith.constant 0 : index
    %c0_2 = arith.constant 0 : index
    %2 = vector.load %arg2[%c0_1, %c0_2] : memref<360x180xbf16, #tpu.memory_space<vmem>>, vector<360x180xbf16>
    %cst = arith.constant dense<0.000000e+00> : vector<8x180xf32>
    %3 = tpu.matmul %1, %2, %cst {dimension_numbers = #tpu.dot_dimension_numbers<[1], [0], [0], [1], [0, 0, 1, 1], [], []>} : vector<8x360xbf16>, vector<360x180xbf16>, vector<8x180xf32> -> vector<8x180xf32>
    %c0_3 = arith.constant 0 : index
    %c0_4 = arith.constant 0 : index
    %4 = vector.load %arg3[%c0_3, %c0_4] : memref<1x180xf32, #tpu.memory_space<vmem>>, vector<1x180xf32>
    %5 = vector.broadcast %4 : vector<1x180xf32> to vector<8x180xf32>
    %6 = arith.addf %3, %5 : vector<8x180xf32>
    %cst_5 = arith.constant 0.000000e+00 : f32
    %7 = vector.broadcast %cst_5 : f32 to vector<8x180xf32>
    %8 = arith.maximumf %6, %7 : vector<8x180xf32>
    %9 = arith.truncf %8 : vector<8x180xf32> to vector<8x180xbf16>
    %c0_6 = arith.constant 0 : index
    %c0_7 = arith.constant 0 : index
    %10 = vector.load %arg4[%c0_6, %c0_7] : memref<180x90xbf16, #tpu.memory_space<vmem>>, vector<180x90xbf16>
    %cst_8 = arith.constant dense<0.000000e+00> : vector<8x90xf32>
    %11 = tpu.matmul %9, %10, %cst_8 {dimension_numbers = #tpu.dot_dimension_numbers<[1], [0], [0], [1], [0, 0, 1, 1], [], []>} : vector<8x180xbf16>, vector<180x90xbf16>, vector<8x90xf32> -> vector<8x90xf32>
    %c0_9 = arith.constant 0 : index
    %c0_10 = arith.constant 0 : index
    %12 = vector.load %arg5[%c0_9, %c0_10] : memref<1x90xf32, #tpu.memory_space<vmem>>, vector<1x90xf32>
    %13 = vector.broadcast %12 : vector<1x90xf32> to vector<8x90xf32>
    %14 = arith.addf %11, %13 : vector<8x90xf32>
    %cst_11 = arith.constant 0.000000e+00 : f32
    %15 = vector.broadcast %cst_11 : f32 to vector<8x90xf32>
    %16 = arith.maximumf %14, %15 : vector<8x90xf32>
    %c0_12 = arith.constant 0 : index
    %c0_13 = arith.constant 0 : index
    %17 = vector.load %arg6[%c0_12, %c0_13] : memref<16x90xbf16, #tpu.memory_space<vmem>>, vector<16x90xbf16>
    %18 = arith.truncf %16 : vector<8x90xf32> to vector<8x90xbf16>
    %cst_14 = arith.constant dense<0.000000e+00> : vector<16x8xf32>
    %19 = tpu.matmul %17, %18, %cst_14 {dimension_numbers = #tpu.dot_dimension_numbers<[1], [1], [0], [0], [0, 0, 1, 0], [], []>} : vector<16x90xbf16>, vector<8x90xbf16>, vector<16x8xf32> -> vector<16x8xf32>
    %c0_15 = arith.constant 0 : index
    %c0_16 = arith.constant 0 : index
    %20 = vector.load %arg7[%c0_15, %c0_16] : memref<16x1xf32, #tpu.memory_space<vmem>>, vector<16x1xf32>
    %21 = vector.broadcast %20 : vector<16x1xf32> to vector<16x8xf32>
    %22 = arith.addf %19, %21 : vector<16x8xf32>
    %c0_17 = arith.constant 0 : index
    %c0_18 = arith.constant 0 : index
    %23 = vector.load %arg8[%c0_17, %c0_18] : memref<16x8xf32, #tpu.memory_space<vmem>>, vector<16x8xf32>
    tpu.vector_store %arg8[%c0_17, %c0_18], %22 {strides = array<i32>} : memref<16x8xf32, #tpu.memory_space<vmem>>, vector<16x8xf32>,
    return
  }
  func.func @transform_0(%arg0: i32) -> (i32, i32) {
    %c0_i32 = arith.constant 0 : i32
    %c0_i32_0 = arith.constant 0 : i32
    return %arg0, %c0_i32 : i32, i32
  }
  func.func @transform_1(%arg0: i32) -> (i32, i32) {
    %c0_i32 = arith.constant 0 : i32
    %c0_i32_0 = arith.constant 0 : i32
    %c0_i32_1 = arith.constant 0 : i32
    return %c0_i32, %c0_i32_0 : i32, i32
  }
  func.func @transform_2(%arg0: i32) -> (i32, i32) {
    %c0_i32 = arith.constant 0 : i32
    %c0_i32_0 = arith.constant 0 : i32
    %c0_i32_1 = arith.constant 0 : i32
    return %c0_i32, %c0_i32_0 : i32, i32
  }
  func.func @transform_3(%arg0: i32) -> (i32, i32) {
    %c0_i32 = arith.constant 0 : i32
    %c0_i32_0 = arith.constant 0 : i32
    %c0_i32_1 = arith.constant 0 : i32
    return %c0_i32, %c0_i32_0 : i32, i32
  }
  func.func @transform_4(%arg0: i32) -> (i32, i32) {
    %c0_i32 = arith.constant 0 : i32
    %c0_i32_0 = arith.constant 0 : i32
    %c0_i32_1 = arith.constant 0 : i32
    return %c0_i32, %c0_i32_0 : i32, i32
  }
  func.func @transform_5(%arg0: i32) -> (i32, i32) {
    %c0_i32 = arith.constant 0 : i32
    %c0_i32_0 = arith.constant 0 : i32
    %c0_i32_1 = arith.constant 0 : i32
    return %c0_i32, %c0_i32_0 : i32, i32
  }
  func.func @transform_6(%arg0: i32) -> (i32, i32) {
    %c0_i32 = arith.constant 0 : i32
    %c0_i32_0 = arith.constant 0 : i32
    %c0_i32_1 = arith.constant 0 : i32
    return %c0_i32, %c0_i32_0 : i32, i32
  }
  func.func @transform_7(%arg0: i32) -> (i32, i32) {
    %c0_i32 = arith.constant 0 : i32
    %c0_i32_0 = arith.constant 0 : i32
    return %c0_i32, %arg0 : i32, i32
  }
}

</mosaic_0001>

<bundles_post_ra>
// kernel: mlp_forward_packed.1
= control target key start
LH: loop header
LB: loop body
LE: loop exit
PB: predicated region body
PF: predicated region fallthrough
CT: control target
= control target key end

     0   :  { %v796_v1 = vmov 0   ;;  %vm319_vm0 = vcmask 1043456   ;;  %vm315_vm1 = vcmask 850944   ;;  %vm515_vm2 = vcmask 1041408   ;;  %s1054_s1 = inlined_call_operand.vmem [shape: bf16[360,180], index: 1, kind: input, shape index: {}]   ;;  %s1055_s0 = inlined_call_operand.vmem [shape: f32[8,360], index: 0, kind: input, shape index: {}]   ;;  %s1056_s3 = inlined_call_operand.vmem [shape: bf16[180,90], index: 3, kind: input, shape index: {}]   ;;  %s1057_s2 = inlined_call_operand.vmem [shape: f32[1,180], index: 2, kind: input, shape index: {}]   ;;  %s1058_s5 = inlined_call_operand.vmem [shape: bf16[16,90], index: 5, kind: input, shape index: {}]   ;;  %s1059_s6 = inlined_call_operand.vmem [shape: f32[16,1], index: 6, kind: input, shape index: {}]   ;;  %s1060_s4 = inlined_call_operand.vmem [shape: f32[1,90], index: 4, kind: input, shape index: {}]   ;;  %s1061_s7 = inlined_call_operand.vmem [shape: f32[16,8], index: 7, kind: output, shape index: {}]  }
   0x1   :  { %v715_v0 = vld [vmem:[%s1054_s1 + $0x4] ss:$8 sps:$4 sm:$0xff]   ;;  %399 = vmatprep.mubr.bf16.mxu1 %v796_v1  ;;  %714 = vset.pattern.permute.xlu0 %v796_v1  ;;  %v717_v2 = vld [vmem:[%s1054_s1] ss:$8 sps:$4 sm:$0xff]   ;;  %v718_v3 = vld [vmem:[%s1054_s1 + $0x14] ss:$8 sps:$4 sm:$0xff]  }
   0x2   :  { %326 = vmatprep.subr.bf16.mxu0 %v715_v0  ;;  %v720_v4 = vld [vmem:[%s1054_s1 + $0x10] ss:$8 sps:$4 sm:$0xff]   ;;  %v721_v5 = vld [vmem:[%s1054_s1 + $0x24] ss:$8 sps:$4 sm:$0xff]   ;;  %v723_v6 = vld [vmem:[%s1054_s1 + $0x20] ss:$8 sps:$4 sm:$0xff]  }
   0x3   :  { %327 = vmatpush1.bf16.msra.mxu0 %v717_v2  ;;  %v724_v7 = vld [vmem:[%s1054_s1 + $0x34] ss:$8 sps:$4 sm:$0xff]   ;;  %v726_v8 = vld [vmem:[%s1054_s1 + $0x30] ss:$8 sps:$4 sm:$0xff]   ;;  %v727_v9 = vld [vmem:[%s1054_s1 + $0x44] ss:$8 sps:$4 sm:$0xff]  }
   0x4   :  { %328 = vmatprep.subr.bf16.mxu0 %v718_v3  ;;  %v742_v10 = vld [vmem:[%s1054_s1 + $0x104] ss:$8 sps:$4 sm:$0xff]   ;;  %v729_v11 = vld [vmem:[%s1054_s1 + $0x40] ss:$8 sps:$4 sm:$0xff]   ;;  %v748_v13 = vld [vmem:[%s1054_s1 + $0x114] ss:$8 sps:$4 sm:$0xff]  }
   0x5   :  { %367 = vmatprep.subr.bf16.mxu1 %v742_v10  ;;  %v746_v12 = vld [vmem:[%s1054_s1 + $0x100] ss:$8 sps:$4 sm:$0xff]   ;;  %v730_v14 = vld [vmem:[%s1054_s1 + $0x54] ss:$8 sps:$4 sm:$0xff]   ;;  %v752_v15 = vld [vmem:[%s1054_s1 + $0x110] ss:$8 sps:$4 sm:$0xff]  }
   0x6   :  { %368 = vmatpush1.bf16.msra.mxu1 %v746_v12  ;;  %v754_v16 = vld [vmem:[%s1054_s1 + $0x124] ss:$8 sps:$4 sm:$0xff]   ;;  %v732_v17 = vld [vmem:[%s1054_s1 + $0x50] ss:$8 sps:$4 sm:$0xff]   ;;  %v758_v19 = vld [vmem:[%s1054_s1 + $0x120] ss:$8 sps:$4 sm:$0xff]  }
   0x7   :  { %329 = vmatpush1.bf16.msra.mxu0 %v720_v4  ;;  %369 = vmatprep.subr.bf16.mxu1 %v748_v13  ;;  %v733_v18 = vld [vmem:[%s1054_s1 + $0x64] ss:$8 sps:$4 sm:$0xff]   ;;  %v760_v20 = vld [vmem:[%s1054_s1 + $0x134] ss:$8 sps:$4 sm:$0xff]   ;;  %v735_v21 = vld [vmem:[%s1054_s1 + $0x60] ss:$8 sps:$4 sm:$0xff]  }
   0x8   :  { %330 = vmatprep.subr.bf16.mxu0 %v721_v5  ;;  %v736_v22 = vld [vmem:[%s1054_s1 + $0x74] ss:$8 sps:$4 sm:$0xff]   ;;  %v764_v23 = vld [vmem:[%s1054_s1 + $0x130] ss:$8 sps:$4 sm:$0xff]   ;;  %v766_v24 = vld [vmem:[%s1054_s1 + $0x144] ss:$8 sps:$4 sm:$0xff]  }
   0x9   :  { %v738_v25 = vld [vmem:[%s1054_s1 + $0x70] ss:$8 sps:$4 sm:$0xff]   ;;  %v739_v26 = vld [vmem:[%s1054_s1 + $0x84] ss:$8 sps:$4 sm:$0xff]   ;;  %v770_v27 = vld [vmem:[%s1054_s1 + $0x140] ss:$8 sps:$4 sm:$0xff]  }
   0xa   :  { %370 = vmatpush1.bf16.msra.mxu1 %v752_v15  ;;  %v772_v28 = vld [vmem:[%s1054_s1 + $0x154] ss:$8 sps:$4 sm:$0xff]   ;;  %v28_v29 = vld [vmem:[%s1055_s0 + $0x8] sm:$0xff]  ;;  %v77_v31 = vld [vmem:[%s1054_s1 + $0x160] sm:$0xff]  ;;  %vm511_vm3 = vcmask 424960   ;;  %vm798_vm4 = vmmov 0  }
   0xb   :  { %331 = vmatpush1.bf16.msra.mxu0 %v723_v6  ;;  %371 = vmatprep.subr.bf16.mxu1 %v754_v16  ;;  %v741_v30 = vld [vmem:[%s1054_s1 + $0x80] ss:$8 sps:$4 sm:$0xff]   ;;  %v31_v32 = vpack.c.bf16 %v28_v29, %v28_v29  ;;  %v744_v33 = vld [vmem:[%s1054_s1 + $0x94] ss:$8 sps:$4 sm:$0xff]   ;;  %v776_v34 = vld [vmem:[%s1054_s1 + $0x150] ss:$8 sps:$4 sm:$0xff]   ;;  %v680_v35 = vcombine.high %v77_v31, %v77_v31  ;;  %v679_v36 = vcombine.low %v77_v31, %v77_v31 }
   0xc   :  { %332 = vmatprep.subr.bf16.mxu0 %v724_v7  ;;  %v747_v37 = vld [vmem:[%s1054_s1 + $0x90] ss:$8 sps:$4 sm:$0xff]   ;;  %v750_v38 = vld [vmem:[%s1054_s1 + $0xa4] ss:$8 sps:$4 sm:$0xff]   ;;  %v753_v40 = vld [vmem:[%s1054_s1 + $0xa0] ss:$8 sps:$4 sm:$0xff]  }
   0xd   :  { %358 = vmatprep.mubr.bf16.mxu0 %v31_v32  ;;  %v29_v39 = vld [vmem:[%s1055_s0 + $0x10] sm:$0xff]  ;;  %v321_v41 = vsel %vm319_vm0, %v679_v36, 0  ;;  %v783_v44 = vld [vmem:[%s1056_s3] sm:$0xff]   ;;  %v784_v47 = vld [vmem:[%s1056_s3 + $0x8] sm:$0xff]   ;;  %vm580_vm5 = vcmask 736256   ;;  %vm628_vm6 = vcmask 64512  }
   0xe   :  { %372 = vmatpush1.bf16.msra.mxu1 %v758_v19  ;;  %v756_v42 = vld [vmem:[%s1054_s1 + $0xb4] ss:$8 sps:$4 sm:$0xff]   ;;  %v32_v43 = vpack.c.bf16 %v29_v39, %v29_v39  ;;  %v759_v45 = vld [vmem:[%s1054_s1 + $0xb0] ss:$8 sps:$4 sm:$0xff]   ;;  %v762_v46 = vld [vmem:[%s1054_s1 + $0xc4] ss:$8 sps:$4 sm:$0xff]  }
   0xf   :  { %333 = vmatpush1.bf16.msra.mxu0 %v726_v8  ;;  %373 = vmatprep.subr.bf16.mxu1 %v760_v20  ;;  %v765_v48 = vld [vmem:[%s1054_s1 + $0xc0] ss:$8 sps:$4 sm:$0xff]   ;;  %v768_v49 = vld [vmem:[%s1054_s1 + $0xd4] ss:$8 sps:$4 sm:$0xff]   ;;  %v771_v51 = vld [vmem:[%s1054_s1 + $0xd0] ss:$8 sps:$4 sm:$0xff]  }
  0x10   :  { %334 = vmatprep.subr.bf16.mxu0 %v727_v9  ;;  %v785_v50 = vld [vmem:[%s1056_s3 + $0x10] sm:$0xff]   ;;  %v774_v52 = vld [vmem:[%s1054_s1 + $0xe4] ss:$8 sps:$4 sm:$0xff]   ;;  %v786_v53 = vld [vmem:[%s1056_s3 + $0x18] sm:$0xff]   ;;  %v80_v9 = vlaneseq }
  0x11   :  { %v777_v54 = vld [vmem:[%s1054_s1 + $0xe0] ss:$8 sps:$4 sm:$0xff]   ;;  %v779_v55 = vld [vmem:[%s1054_s1 + $0xf4] ss:$8 sps:$4 sm:$0xff]   ;;  %v782_v57 = vld [vmem:[%s1054_s1 + $0xf0] ss:$8 sps:$4 sm:$0xff]  }
  0x12   :  { %374 = vmatpush1.bf16.msra.mxu1 %v764_v23  ;;  %v787_v56 = vld [vmem:[%s1056_s3 + $0x20] sm:$0xff]   ;;  %v788_v59 = vld [vmem:[%s1056_s3 + $0x28] sm:$0xff]   ;;  %v789_v61 = vld [vmem:[%s1056_s3 + $0x30] sm:$0xff]   ;;  %v81_v10 = vshrl.u32 %v80_v9, 7 }
  0x13   :  { %335 = vmatpush1.bf16.msra.mxu0 %v729_v11  ;;  %375 = vmatprep.subr.bf16.mxu1 %v766_v24  ;;  %v27_v58 = vld [vmem:[%s1055_s0] sm:$0xff]  ;;  %v790_v62 = vld [vmem:[%s1056_s3 + $0x38] sm:$0xff]   ;;  %v792_v0 = vld [vmem:[%s1056_s3 + $0x48] sm:$0xff]  }
  0x14   :  { %336 = vmatprep.subr.bf16.mxu0 %v730_v14  ;;  %v30_v60 = vpack.c.bf16 %v27_v58, %v27_v58  ;;  %v791_v63 = vld [vmem:[%s1056_s3 + $0x40] sm:$0xff]   ;;  %v793_v2 = vld [vmem:[%s1056_s3 + $0x50] sm:$0xff]   ;;  %v794_v3 = vld [vmem:[%s1056_s3 + $0x58] ss:$0 sps:$4 sm:$0x33]   ;;  %v82_v11 = vsub.s32 0, %v81_v10 }
  0x15   :  { %v517_v4 = vsel %vm515_vm2, %v794_v3, 0  ;;  %v78_v12 = vld [vmem:[%s1057_s2] sm:$0x3]  ;;  %v86_v13 = vsub.s32 1, %v81_v10  ;;  %v564_v29 = vld [vmem:[%s1059_s6 + $0x8] sm:$0xff] }
  0x16   :  { %376 = vmatpush1.bf16.msra.mxu1 %v770_v27  ;;  %v797_v27 = vmov 0.0   ;;  %v795_v39 = vld [vmem:[%s1058_s5] sm:$0xff]  }
  0x17   :  { %337 = vmatpush1.bf16.msra.mxu0 %v732_v17  ;;  %377 = vmatprep.subr.bf16.mxu1 %v772_v28  ;;  %v87_v14 = vrot.slane %v78_v12, %v86_v13  ;;  %v563_v28 = vld [vmem:[%s1059_s6] sm:$0xff] }
  0x18   :  { %338 = vmatprep.subr.bf16.mxu0 %v733_v18  ;;  %567 = vperm.xlu0 %714, %v563_v28  }
  0x1a   :  { %378 = vmatpush1.bf16.msra.mxu1 %v776_v34 }
  0x1b   :  { %339 = vmatpush1.bf16.msra.mxu0 %v735_v21  ;;  %681 = vmatprep.subr.msk.bf16.mxu1 %vm319_vm0, %v680_v35 }
  0x1c   :  { %340 = vmatprep.subr.bf16.mxu0 %v736_v22  ;;  %572 = vperm.xlu0 %714, %v564_v29  }
  0x1e   :  { %380 = vmatpush1.bf16.msra.mxu1 %v321_v41 }
  0x1f   :  { %341 = vmatpush1.bf16.msra.mxu0 %v738_v25  ;;  %519 = vmatprep.subr.bf16.mxu1 %v796_v1 }
  0x20   :  { %342 = vmatprep.subr.bf16.mxu0 %v739_v26 }
  0x21   :  { %682 = vmatmul.mubr.msk.bf16.vlgmr.msra.gmra.mrb[0].mxu1 %vm315_vm1, %v32_v43 }
  0x22   :  { %520 = vmatpush1.bf16.msra.mxu1 %v783_v44 }
  0x23   :  { %343 = vmatpush1.bf16.msra.mxu0 %v741_v30  ;;  %521 = vmatprep.subr.bf16.mxu1 %v796_v1  ;;  %v683_v30 = vld [vmem:[%s1060_s4] ss:$0 sm:$0xff] }
  0x24   :  { %344 = vmatprep.subr.bf16.mxu0 %v744_v33 }
  0x26   :  { %522 = vmatpush1.bf16.msra.mxu1 %v784_v47 }
  0x27   :  { %345 = vmatpush1.bf16.msra.mxu0 %v747_v37  ;;  %523 = vmatprep.subr.bf16.mxu1 %v796_v1 }
  0x28   :  { %346 = vmatprep.subr.bf16.mxu0 %v750_v38 }
  0x2a   :  { %524 = vmatpush1.bf16.msra.mxu1 %v785_v50 }
  0x2b   :  { %347 = vmatpush1.bf16.msra.mxu0 %v753_v40  ;;  %525 = vmatprep.subr.bf16.mxu1 %v796_v1 }
  0x2c   :  { %348 = vmatprep.subr.bf16.mxu0 %v756_v42 }
  0x2e   :  { %526 = vmatpush1.bf16.msra.mxu1 %v786_v53 }
  0x2f   :  { %349 = vmatpush1.bf16.msra.mxu0 %v759_v45  ;;  %527 = vmatprep.subr.bf16.mxu1 %v796_v1 }
  0x30   :  { %350 = vmatprep.subr.bf16.mxu0 %v762_v46 }
  0x32   :  { %528 = vmatpush1.bf16.msra.mxu1 %v787_v56 }
  0x33   :  { %351 = vmatpush1.bf16.msra.mxu0 %v765_v48  ;;  %529 = vmatprep.subr.bf16.mxu1 %v796_v1 }
  0x34   :  { %352 = vmatprep.subr.bf16.mxu0 %v768_v49 }
  0x36   :  { %530 = vmatpush1.bf16.msra.mxu1 %v788_v59 }
  0x37   :  { %353 = vmatpush1.bf16.msra.mxu0 %v771_v51  ;;  %531 = vmatprep.subr.bf16.mxu1 %v796_v1 }
  0x38   :  { %354 = vmatprep.subr.bf16.mxu0 %v774_v52 }
  0x3a   :  { %532 = vmatpush1.bf16.msra.mxu1 %v789_v61 }
  0x3b   :  { %355 = vmatpush1.bf16.msra.mxu0 %v777_v54  ;;  %533 = vmatprep.subr.bf16.mxu1 %v796_v1 }
  0x3c   :  { %356 = vmatprep.subr.bf16.mxu0 %v779_v55 }
  0x3e   :  { %534 = vmatpush1.bf16.msra.mxu1 %v790_v62 }
  0x3f   :  { %357 = vmatpush1.bf16.msra.mxu0 %v782_v57  ;;  %535 = vmatprep.subr.bf16.mxu1 %v796_v1 }
  0x40   :  { %701 = vmatprep.subr.bf16.mxu0 %v797_v27 }
  0x42   :  { %359 = vmatmul.mubr.bf16.vlgmr.msra.gmra.mrb[0].mxu0 %v30_v60  ;;  %536 = vmatpush1.bf16.msra.mxu1 %v791_v63 }
  0x43   :  { %537 = vmatprep.subr.bf16.mxu1 %v796_v1  ;;  %703 = vmatprep.mubr.msk.bf16.mxu0 %vm798_vm4, %v797_v27 }
  0x46   :  { %538 = vmatpush1.bf16.msra.mxu1 %v792_v0 }
  0x47   :  { %539 = vmatprep.subr.bf16.mxu1 %v796_v1 }
  0x4a   :  { %540 = vmatpush1.bf16.msra.mxu1 %v793_v2 }
  0x4b   :  { %541 = vmatprep.subr.bf16.mxu1 %v796_v1  ;;  %v83_v1 = vrot.slane %v78_v12, %v82_v11 }
  0x4e   :  { %542 = vmatpush1.bf16.msra.mxu1 %v517_v4 }
  0x97   :  { %v568_v40 = vpop.permute.xlu0 %567 }
  0x9b   :  { %v573_v44 = vpop.permute.xlu0 %572 }
  0xf4   :  { %v401_v5 = vpop.f32.mrb[0].mxu1 }
  0xf5   :  { %v403_v6 = vpop.f32.mrb[1].mxu1 }
  0xf6   :  { %v405_v7 = vpop.f32.mrb[2].mxu1 }
  0xf7   :  { %v406_v8 = vpop.f32.mrb[3].mxu1 }
 0x115   :  { %v360_v15 = vpop.f32.mrb[0].mxu0 }
 0x116   :  { %v361_v16 = vadd.f32 %v360_v15, %v83_v1  ;;  %v362_v17 = vpop.f32.mrb[1].mxu0 }
 0x117   :  { %v363_v18 = vadd.f32 %v362_v17, %v87_v14  ;;  %v364_v19 = vpop.f32.mrb[2].mxu0 }
 0x118   :  { %v402_v20 = vadd.f32 %v401_v5, %v361_v16  ;;  %v365_v21 = vpop.f32.mrb[3].mxu0 }
 0x119   :  { %v404_v22 = vadd.f32 %v403_v6, %v363_v18 }
 0x11a   :  { %v408_v23 = vmax.f32 %v402_v20, 0.0 }
 0x11b   :  { %v409_v24 = vmax.f32 %v404_v22, 0.0 }
 0x11c   :  { %v410_v26 = vpack.c.bf16 %v408_v23, %v408_v23 }
 0x11d   :  { %v411_v25 = vpack.c.bf16 %v409_v24, %v409_v24 }
 0x11f   :  { %696 = vmatprep.mubr.msk.bf16.mxu1 %vm511_vm3, %v411_v25 }
 0x120   :  { %552 = vmatmul.mubr.bf16.vlgmr.msra.gmra.mrb[4].mxu1 %v410_v26 }
 0x1f3   :  { %v553_v31 = vpop.f32.mrb[4].mxu1 }
 0x1f4   :  { %v554_v32 = vadd.f32 %v683_v30, %v553_v31  ;;  %v555_v33 = vpop.f32.mrb[5].mxu1 }
 0x1f5   :  { %v556_v34 = vpop.f32.mrb[6].mxu1 }
 0x1f6   :  { %v559_v35 = vmax.f32 %v554_v32, 0.0  ;;  %v557_v36 = vpop.f32.mrb[7].mxu1 }
 0x1f8   :  { %v562_v37 = vpack.c.bf16 %v559_v35, %v559_v35 }
 0x1fa   :  { %v585_v38 = vsel %vm580_vm5, %v562_v37, 0 }
 0x1fb   :  { %702 = vmatpush3.bf16.xpose.msra.mxu0 %v585_v38 }
 0x202   :  { %704 = vmatmul.mubr.msk.bf16.vlgmr.msra.gmra.mrb[4].mxu0 %vm580_vm5, %v795_v39 }
 0x2d5   :  { %v621_v41 = vpop.f32.mrb[4].mxu0 }
 0x2d6   :  { %v622_v42 = vadd.f32 %v621_v41, %v568_v40  ;;  %v705_v43 = vpop.f32.mrb[5].mxu0 }
 0x2d7   :  { %v624_v45 = vpop.f32.mrb[6].mxu0 }
 0x2d8   :  { %629 = vst.msk [vmem:[%s1061_s7] sm:$0xff] %vm628_vm6, %v622_v42  ;;  %v625_v46 = vadd.f32 %v624_v45, %v573_v44  ;;  %v706_v47 = vpop.f32.mrb[7].mxu0 }
 0x2da   :  { %630 = vst.msk [vmem:[%s1061_s7 + $0x8] sm:$0xff] %vm628_vm6, %v625_v46 }

</bundles_post_ra>
